<compile_context>
chip_gen: v7x
topology: tpu7x:2x2x1
jax: 0.10.0
libtpu: 0.0.40
codegen_flags: <defaults>
</compile_context>

<pallas_src>
import functools

import jax
import jax.numpy as jnp
from jax import lax
from jax.experimental import pallas as pl
from jax.experimental.pallas import tpu as pltpu

BN_EPS = 1e-5
LANE = 128


def _round_up(n, m=LANE):
    return ((n + m - 1) // m) * m


def actor_kernel(x_ref, w1_ref, gamma_ref, beta_ref,
                 w2_ref, b2_ref, w3_ref, b3_ref, out_ref):
    # ---- fc1 (bf16 operands, f32 accumulation).  b1 is omitted: it cancels
    # exactly under the batch-mean subtraction of training-mode BatchNorm. ----
    h1 = jnp.dot(x_ref[...], w1_ref[...], preferred_element_type=jnp.float32)

    # ---- BatchNorm1d (training-mode batch statistics, biased variance), f32 ----
    mean = jnp.mean(h1, axis=0, keepdims=True)
    centered = h1 - mean
    var = jnp.mean(centered * centered, axis=0, keepdims=True)
    scale = lax.rsqrt(var + BN_EPS) * gamma_ref[...]
    h1n = centered * scale + beta_ref[...]

    # ---- relu -> fc2 -> relu (matmul operands in bf16, elementwise in f32) ----
    h1r = jnp.maximum(h1n, 0.0).astype(jnp.bfloat16)
    h2 = jnp.dot(h1r, w2_ref[...], preferred_element_type=jnp.float32) + b2_ref[...]
    h2r = jnp.maximum(h2, 0.0).astype(jnp.bfloat16)

    # ---- fc3 -> tanh (lane-dense padded output; sliced in the wrapper) ----
    h3 = jnp.dot(h2r, w3_ref[...], preferred_element_type=jnp.float32) + b3_ref[...]
    out_ref[...] = jnp.tanh(h3)


@functools.partial(jax.jit, static_argnames=("action_size",))
def actor_forward(x, params, action_size):
    """x: (batch, state_size) f32; params: padded/bf16 dict from pad_actor_params."""
    batch, state_size = x.shape
    f1p = params["w1"].shape[1]
    f2p = params["w2"].shape[1]
    outp = params["w3"].shape[1]

    vmem = pl.BlockSpec(memory_space=pltpu.MemorySpace.VMEM)

    flops = 2 * batch * (state_size * f1p + f1p * f2p + f2p * outp)
    bytes_accessed = (
        x.size * 2
        + (params["w1"].size + params["w2"].size + params["w3"].size) * 2  # bf16
        + (2 * f1p + f2p + outp) * 4                                       # gamma/beta/b2/b3
        + batch * outp * 4                                                 # output
    )
    transcendentals = batch * outp + f1p  # tanh + rsqrt

    # TODO(synk): for large batches (training), add a ("parallel",) batch grid
    # sized for v7x's 64 MiB VMEM with a two-pass full-batch BN-stats step, and
    # keep weights VMEM-resident across calls (cross-pallas_call prefetch) to
    # amortize the weight DMA at small batch in tight RL inference loops.
    out_padded = pl.pallas_call(
        actor_kernel,
        out_shape=jax.ShapeDtypeStruct((batch, outp), jnp.float32),
        in_specs=[vmem] * 8,
        out_specs=vmem,
        cost_estimate=pl.CostEstimate(
            flops=flops,
            transcendentals=transcendentals,
            bytes_accessed=bytes_accessed,
        ),
    )(x.astype(jnp.bfloat16),
      params["w1"], params["gamma"], params["beta"],
      params["w2"], params["b2"], params["w3"], params["b3"])

    # Lane-dense store inside the kernel; slice to the logical action dim here.
    return out_padded[:, :action_size]


def init_actor_params(key, state_size, action_size,
                      fc1_units=400, fc2_units=300):
    """Logical (unpadded, f32) params mimicking the PyTorch reset_parameters().

    Note: PyTorch's hidden_init uses weight.size()[0] == out_features as
    'fan_in'; we replicate that quirk for numerical-range fidelity.
    Weights are stored as (in_features, out_features) so the hot path is x @ W.
    """
    ks = jax.random.split(key, 6)
    lim1 = 1.0 / jnp.sqrt(jnp.float32(fc1_units))
    lim2 = 1.0 / jnp.sqrt(jnp.float32(fc2_units))

    w1 = jax.random.uniform(ks[0], (state_size, fc1_units), jnp.float32, -lim1, lim1)
    b1 = jax.random.uniform(ks[1], (1, fc1_units), jnp.float32,
                            -1.0 / jnp.sqrt(jnp.float32(state_size)),
                            1.0 / jnp.sqrt(jnp.float32(state_size)))
    w2 = jax.random.uniform(ks[2], (fc1_units, fc2_units), jnp.float32, -lim2, lim2)
    b2 = jax.random.uniform(ks[3], (1, fc2_units), jnp.float32,
                            -1.0 / jnp.sqrt(jnp.float32(fc1_units)),
                            1.0 / jnp.sqrt(jnp.float32(fc1_units)))
    w3 = jax.random.uniform(ks[4], (fc2_units, action_size), jnp.float32, -3e-3, 3e-3)
    b3 = jax.random.uniform(ks[5], (1, action_size), jnp.float32,
                            -1.0 / jnp.sqrt(jnp.float32(fc2_units)),
                            1.0 / jnp.sqrt(jnp.float32(fc2_units)))
    gamma = jnp.ones((1, fc1_units), jnp.float32)   # BatchNorm1d default weight
    beta = jnp.zeros((1, fc1_units), jnp.float32)   # BatchNorm1d default bias
    return dict(w1=w1, b1=b1, gamma=gamma, beta=beta,
                w2=w2, b2=b2, w3=w3, b3=b3)


def pad_actor_params(p):
    """Zero-pad feature dims to multiples of 128 and cast weights to bf16.

    Padding is exact: padded fc1/fc2 units have zero weights + zero bias/beta,
    so they stay identically zero through BN/relu and contribute nothing; the
    padded output columns are sliced away in the wrapper.
    """
    state_size, f1 = p["w1"].shape
    f2 = p["w2"].shape[1]
    a = p["w3"].shape[1]
    f1p, f2p, ap = _round_up(f1), _round_up(f2), _round_up(a)

    def pad2(m, rows, cols):
        out = jnp.zeros((rows, cols), m.dtype)
        return out.at[:m.shape[0], :m.shape[1]].set(m)

    return dict(
        w1=pad2(p["w1"], state_size, f1p).astype(jnp.bfloat16),
        gamma=pad2(p["gamma"], 1, f1p),
        beta=pad2(p["beta"], 1, f1p),
        w2=pad2(p["w2"], f1p, f2p).astype(jnp.bfloat16),
        b2=pad2(p["b2"], 1, f2p),
        w3=pad2(p["w3"], f2p, ap).astype(jnp.bfloat16),
        b3=pad2(p["b3"], 1, ap),
    )


def actor_forward_ref_f32(x, p):
    """Pure-JAX full-f32 reference (bit-faithful to the PyTorch math)."""
    h1 = x @ p["w1"] + p["b1"]
    mean = jnp.mean(h1, axis=0, keepdims=True)
    var = jnp.mean((h1 - mean) ** 2, axis=0, keepdims=True)
    h1n = (h1 - mean) / jnp.sqrt(var + BN_EPS) * p["gamma"] + p["beta"]
    h2 = jnp.maximum(jnp.maximum(h1n, 0.0) @ p["w2"] + p["b2"], 0.0)
    return jnp.tanh(h2 @ p["w3"] + p["b3"])


def actor_forward_ref_bf16(x, p):
    """Pure-JAX reference mirroring the kernel's bf16-operand matmul path."""
    xb = x.astype(jnp.bfloat16)
    w1 = p["w1"].astype(jnp.bfloat16)
    w2 = p["w2"].astype(jnp.bfloat16)
    w3 = p["w3"].astype(jnp.bfloat16)
    h1 = jnp.dot(xb, w1, preferred_element_type=jnp.float32)  # b1 cancels under BN
    mean = jnp.mean(h1, axis=0, keepdims=True)
    centered = h1 - mean
    var = jnp.mean(centered * centered, axis=0, keepdims=True)
    h1n = centered * lax.rsqrt(var + BN_EPS) * p["gamma"] + p["beta"]
    h1r = jnp.maximum(h1n, 0.0).astype(jnp.bfloat16)
    h2 = jnp.dot(h1r, w2, preferred_element_type=jnp.float32) + p["b2"]
    h2r = jnp.maximum(h2, 0.0).astype(jnp.bfloat16)
    return jnp.tanh(jnp.dot(h2r, w3, preferred_element_type=jnp.float32) + p["b3"])


if __name__ == "__main__":
    key = jax.random.PRNGKey(0)
    k_param, k_x = jax.random.split(key)

    batch, state_size, action_size = 8, 32, 4
    logical = init_actor_params(k_param, state_size, action_size,
                                fc1_units=400, fc2_units=300)
    padded = pad_actor_params(logical)
    x = jax.random.normal(k_x, (batch, state_size), jnp.float32)

    out = actor_forward(x, padded, action_size)
    out = jax.block_until_ready(out)
    assert out.shape == (batch, action_size)

    # Tight check vs. a reference that mirrors the kernel's bf16 matmul path.
    ref_bf16 = actor_forward_ref_bf16(x, logical)
    assert jnp.allclose(out, ref_bf16, atol=2e-3, rtol=2e-3), \
        "mismatch vs bf16-path JAX reference"

    # Loose check vs. the full-f32 PyTorch-equivalent math (bf16 operand error).
    ref_f32 = actor_forward_ref_f32(x, logical)
    assert jnp.allclose(out, ref_f32, atol=3e-2, rtol=3e-2), \
        "mismatch vs f32 JAX reference"

    print("KERNEL_OK")
</pallas_src>

<mosaic_0001>
module attributes {stable_mosaic.version = 11 : i64} {
  func.func @actor_kernel(%arg0: memref<8x32xbf16, #tpu.memory_space<vmem>>, %arg1: memref<32x512xbf16, #tpu.memory_space<vmem>>, %arg2: memref<1x512xf32, #tpu.memory_space<vmem>>, %arg3: memref<1x512xf32, #tpu.memory_space<vmem>>, %arg4: memref<512x384xbf16, #tpu.memory_space<vmem>>, %arg5: memref<1x384xf32, #tpu.memory_space<vmem>>, %arg6: memref<384x128xbf16, #tpu.memory_space<vmem>>, %arg7: memref<1x128xf32, #tpu.memory_space<vmem>>, %arg8: memref<8x128xf32, #tpu.memory_space<vmem>>) attributes {dimension_semantics = [], scalar_prefetch = 0 : i64, scratch_operands = 0 : i64, tpu.core_type = #tpu.core_type<tc>} {
    %c0 = arith.constant 0 : index
    %c0_0 = arith.constant 0 : index
    %0 = vector.load %arg0[%c0, %c0_0] : memref<8x32xbf16, #tpu.memory_space<vmem>>, vector<8x32xbf16>
    %c0_1 = arith.constant 0 : index
    %c0_2 = arith.constant 0 : index
    %1 = vector.load %arg1[%c0_1, %c0_2] : memref<32x512xbf16, #tpu.memory_space<vmem>>, vector<32x512xbf16>
    %cst = arith.constant dense<0.000000e+00> : vector<8x512xf32>
    %2 = tpu.matmul %0, %1, %cst {dimension_numbers = #tpu.dot_dimension_numbers<[1], [0], [0], [1], [0, 0, 1, 1], [], []>} : vector<8x32xbf16>, vector<32x512xbf16>, vector<8x512xf32> -> vector<8x512xf32>
    %cst_3 = arith.constant dense<0.000000e+00> : vector<512xf32>
    %3 = vector.multi_reduction <add>, %2, %cst_3 [0] : vector<8x512xf32> to vector<512xf32>
    %4 = vector.shape_cast %3 : vector<512xf32> to vector<1x512xf32>
    %cst_4 = arith.constant 8.000000e+00 : f32
    %5 = vector.broadcast %cst_4 : f32 to vector<1x512xf32>
    %6 = arith.divf %4, %5 : vector<1x512xf32>
    %7 = vector.broadcast %6 : vector<1x512xf32> to vector<8x512xf32>
    %8 = arith.subf %2, %7 : vector<8x512xf32>
    %9 = arith.mulf %8, %8 : vector<8x512xf32>
    %cst_5 = arith.constant dense<0.000000e+00> : vector<512xf32>
    %10 = vector.multi_reduction <add>, %9, %cst_5 [0] : vector<8x512xf32> to vector<512xf32>
    %11 = vector.shape_cast %10 : vector<512xf32> to vector<1x512xf32>
    %cst_6 = arith.constant 8.000000e+00 : f32
    %12 = vector.broadcast %cst_6 : f32 to vector<1x512xf32>
    %13 = arith.divf %11, %12 : vector<1x512xf32>
    %cst_7 = arith.constant 9.99999974E-6 : f32
    %14 = vector.broadcast %cst_7 : f32 to vector<1x512xf32>
    %15 = arith.addf %13, %14 : vector<1x512xf32>
    %16 = math.rsqrt %15 : vector<1x512xf32>
    %c0_8 = arith.constant 0 : index
    %c0_9 = arith.constant 0 : index
    %17 = vector.load %arg2[%c0_8, %c0_9] : memref<1x512xf32, #tpu.memory_space<vmem>>, vector<1x512xf32>
    %18 = arith.mulf %16, %17 : vector<1x512xf32>
    %19 = vector.broadcast %18 : vector<1x512xf32> to vector<8x512xf32>
    %20 = arith.mulf %8, %19 : vector<8x512xf32>
    %c0_10 = arith.constant 0 : index
    %c0_11 = arith.constant 0 : index
    %21 = vector.load %arg3[%c0_10, %c0_11] : memref<1x512xf32, #tpu.memory_space<vmem>>, vector<1x512xf32>
    %22 = vector.broadcast %21 : vector<1x512xf32> to vector<8x512xf32>
    %23 = arith.addf %20, %22 : vector<8x512xf32>
    %cst_12 = arith.constant 0.000000e+00 : f32
    %24 = vector.broadcast %cst_12 : f32 to vector<8x512xf32>
    %25 = arith.maximumf %23, %24 : vector<8x512xf32>
    %26 = arith.truncf %25 : vector<8x512xf32> to vector<8x512xbf16>
    %c0_13 = arith.constant 0 : index
    %c0_14 = arith.constant 0 : index
    %27 = vector.load %arg4[%c0_13, %c0_14] : memref<512x384xbf16, #tpu.memory_space<vmem>>, vector<512x384xbf16>
    %cst_15 = arith.constant dense<0.000000e+00> : vector<8x384xf32>
    %28 = tpu.matmul %26, %27, %cst_15 {dimension_numbers = #tpu.dot_dimension_numbers<[1], [0], [0], [1], [0, 0, 1, 1], [], []>} : vector<8x512xbf16>, vector<512x384xbf16>, vector<8x384xf32> -> vector<8x384xf32>
    %c0_16 = arith.constant 0 : index
    %c0_17 = arith.constant 0 : index
    %29 = vector.load %arg5[%c0_16, %c0_17] : memref<1x384xf32, #tpu.memory_space<vmem>>, vector<1x384xf32>
    %30 = vector.broadcast %29 : vector<1x384xf32> to vector<8x384xf32>
    %31 = arith.addf %28, %30 : vector<8x384xf32>
    %cst_18 = arith.constant 0.000000e+00 : f32
    %32 = vector.broadcast %cst_18 : f32 to vector<8x384xf32>
    %33 = arith.maximumf %31, %32 : vector<8x384xf32>
    %34 = arith.truncf %33 : vector<8x384xf32> to vector<8x384xbf16>
    %c0_19 = arith.constant 0 : index
    %c0_20 = arith.constant 0 : index
    %35 = vector.load %arg6[%c0_19, %c0_20] : memref<384x128xbf16, #tpu.memory_space<vmem>>, vector<384x128xbf16>
    %cst_21 = arith.constant dense<0.000000e+00> : vector<8x128xf32>
    %36 = tpu.matmul %34, %35, %cst_21 {dimension_numbers = #tpu.dot_dimension_numbers<[1], [0], [0], [1], [0, 0, 1, 1], [], []>} : vector<8x384xbf16>, vector<384x128xbf16>, vector<8x128xf32> -> vector<8x128xf32>
    %c0_22 = arith.constant 0 : index
    %c0_23 = arith.constant 0 : index
    %37 = vector.load %arg7[%c0_22, %c0_23] : memref<1x128xf32, #tpu.memory_space<vmem>>, vector<1x128xf32>
    %38 = vector.broadcast %37 : vector<1x128xf32> to vector<8x128xf32>
    %39 = arith.addf %36, %38 : vector<8x128xf32>
    %40 = math.tanh %39 : vector<8x128xf32>
    %c0_24 = arith.constant 0 : index
    %c0_25 = arith.constant 0 : index
    %41 = vector.load %arg8[%c0_24, %c0_25] : memref<8x128xf32, #tpu.memory_space<vmem>>, vector<8x128xf32>
    tpu.vector_store %arg8[%c0_24, %c0_25], %40 {strides = array<i32>} : memref<8x128xf32, #tpu.memory_space<vmem>>, vector<8x128xf32>,
    return
  }
}

</mosaic_0001>

<bundles_post_ra>
// kernel: actor_forward.1
= control target key start
LH: loop header
LB: loop body
LE: loop exit
PB: predicated region body
PF: predicated region fallthrough
CT: control target
= control target key end

     0   :  { %13 = vsyncpa [#allocation3], 0  ;;  %s2121_s0 = inlined_call_operand.vmem [shape: bf16[8,32], index: 0, kind: input, shape index: {}]   ;;  %s2122_s1 = inlined_call_operand.hbm [shape: bf16[32,512], index: 1, kind: input, shape index: {}]   ;;  %s2123_s2 = inlined_call_operand.vmem [shape: f32[1,512], index: 2, kind: input, shape index: {}]   ;;  %s2124_s3 = inlined_call_operand.vmem [shape: f32[1,512], index: 3, kind: input, shape index: {}]   ;;  %s2125_s4 = inlined_call_operand.hbm [shape: bf16[512,384], index: 4, kind: input, shape index: {}]   ;;  %s2126_s5 = inlined_call_operand.vmem [shape: f32[1,384], index: 5, kind: input, shape index: {}]   ;;  %s2127_s6 = inlined_call_operand.hbm [shape: bf16[384,128], index: 6, kind: input, shape index: {}]   ;;  %s2128_s7 = inlined_call_operand.vmem [shape: f32[1,128], index: 7, kind: input, shape index: {}]   ;;  %s2129_s8 = inlined_call_operand.vmem [shape: f32[8,128], index: 8, kind: output, shape index: {}]  }
   0x1   :  { %14 = vsyncpa [#allocation5], 0  ;;  %s1959_s27 = smov [#allocation4]   ;;  %s1889_s9 = scalar_lea.hbm %s2125_s4, 12288 }
   0x2   :  { %s38_s28 = sshll.u32 %s1959_s27, 4  ;;  %p1890_p0 = scmp.ne.s32.totalorder %s2125_s4, %s1889_s9  ;;  %s39_s28 = int_to_ptr.vmem [resolvable:$true] %s38_s28 }
   0x3   :  { %p1893_p1 = scmp.lt.u32.totalorder %s1889_s9, %s2125_s4 }
   0x5   :  { %p1895_p2 = pnand %p1893_p1, %p1890_p0 }
   0x7   :  { %1898 = shalt.err (!%p1895_p2)
}
   0x8   :  { %s1899_s14 = scalar_lea.vmem %s39_s28, 12288  ;;  %p1904_p4 = scmp.lt.s32.totalorder %s39_s28, %s39_s28 }
   0x9   :  { %p1900_p3 = scmp.ne.s32.totalorder %s39_s28, %s1899_s14  ;;  %p1905_p5 = scmp.lt.s32.totalorder %s1899_s14, %s1899_s14 }
   0xb   :  { %p1906_p6 = por %p1905_p5, %p1904_p4 }
   0xd   :  { %p1907_p7 = pnand %p1906_p6, %p1900_p3 }
   0xf   :  { %1910 = shalt.err (!%p1907_p7)
}
  0x10   :  { %s1960_s15 = smov 192   ;;  %s1961_s16 = smov 12  }
  0x11   :  { %44 = dma.hbm_to_vmem [thread:$0]  %s2125_s4, 12288, %s39_s28, [#allocation5], %s1960_s15, %s1960_s15, %s1961_s16  }
  0x12   :  { %s1962_s19 = smov [#allocation2]   ;;  %s1911_s23 = scalar_lea.hbm %s2122_s1, 1024 }
  0x13   :  { %s22_s20 = sshll.u32 %s1962_s19, 4  ;;  %p1912_p8 = scmp.ne.s32.totalorder %s2122_s1, %s1911_s23  ;;  %s23_s20 = int_to_ptr.vmem [resolvable:$true] %s22_s20 }
  0x14   :  { %p1915_p9 = scmp.lt.u32.totalorder %s1911_s23, %s2122_s1 }
  0x16   :  { %p1917_p10 = pnand %p1915_p9, %p1912_p8 }
  0x18   :  { %1920 = shalt.err (!%p1917_p10)
}
  0x19   :  { %s1921_s29 = scalar_lea.vmem %s23_s20, 1024  ;;  %p1926_p12 = scmp.lt.s32.totalorder %s23_s20, %s23_s20 }
  0x1a   :  { %p1922_p11 = scmp.ne.s32.totalorder %s23_s20, %s1921_s29  ;;  %p1927_p13 = scmp.lt.s32.totalorder %s1921_s29, %s1921_s29 }
  0x1c   :  { %p1928_p0 = por %p1927_p13, %p1926_p12 }
  0x1e   :  { %p1929_p1 = pnand %p1928_p0, %p1922_p11 }
  0x20   :  { %1932 = shalt.err (!%p1929_p1)
}
  0x21   :  { %s1963_s4 = smov 256   ;;  %s1964_s28 = smov 16  }
  0x22   :  { %28 = dma.hbm_to_vmem [thread:$0]  %s2122_s1, 1024, %s23_s20, [#allocation3], %s1963_s4, %s1963_s4, %s1964_s28  }
  0x23   :  { %s1965_s10 = smov [#allocation6]   ;;  %s1933_s14 = scalar_lea.hbm %s2127_s6, 3072 }
  0x24   :  { %s52_s11 = sshll.u32 %s1965_s10, 4  ;;  %p1934_p2 = scmp.ne.s32.totalorder %s2127_s6, %s1933_s14  ;;  %s53_s11 = int_to_ptr.vmem [resolvable:$true] %s52_s11 }
  0x25   :  { %p1937_p3 = scmp.lt.u32.totalorder %s1933_s14, %s2127_s6 }
  0x27   :  { %p1939_p4 = pnand %p1937_p3, %p1934_p2 }
  0x29   :  { %1942 = shalt.err (!%p1939_p4)
}
  0x2a   :  { %s1943_s19 = scalar_lea.vmem %s53_s11, 3072  ;;  %p1948_p6 = scmp.lt.s32.totalorder %s53_s11, %s53_s11 }
  0x2b   :  { %p1944_p5 = scmp.ne.s32.totalorder %s53_s11, %s1943_s19  ;;  %p1949_p7 = scmp.lt.s32.totalorder %s1943_s19, %s1943_s19 }
  0x2d   :  { %p1950_p8 = por %p1949_p7, %p1948_p6 }
  0x2f   :  { %p1951_p9 = pnand %p1950_p8, %p1944_p5 }
  0x31   :  { %1954 = shalt.err (!%p1951_p9)
}
  0x32   :  { %s1966_s1 = smov 64   ;;  %s1967_s20 = smov 4  }
  0x33   :  { %58 = dma.hbm_to_vmem [thread:$0]  %s2127_s6, 3072, %s53_s11, [#allocation5], %s1966_s1, %s1966_s1, %s1967_s20  }
  0x34   :  { %1955 = dma.done.wait [#allocation3], 1024  }
  0x35   :  { %1956 = vsyncadd [#allocation3], 4294966272 }
  0x36   :  { %1957 = dma.done.wait [#allocation5], 15360  }
  0x37   :  { %1958 = vsyncadd [#allocation5], 4294951936  ;;  %v1968_v0 = vmov 0   ;;  %v1715_v1 = vld [vmem:[#allocation2 + $0x4] ss:$16 sps:$4 sm:$0xff]   ;;  %vm120_vm0 = vcmask 261120  }
  0x38   :  { %156 = vmatprep.mubr.bf16.mxu0 %v1968_v0  ;;  %197 = vmatprep.mubr.bf16.mxu1 %v1968_v0  ;;  %v1717_v2 = vld [vmem:[#allocation2] ss:$16 sps:$4 sm:$0xff]   ;;  %v1718_v3 = vld [vmem:[#allocation2 + $0x24] ss:$16 sps:$4 sm:$0xff]   ;;  %v1721_v5 = vld [vmem:[#allocation2 + $0xc] ss:$16 sps:$4 sm:$0xff]  }
  0x39   :  { %124 = vmatprep.subr.bf16.mxu0 %v1715_v1  ;;  %v1720_v4 = vld [vmem:[#allocation2 + $0x20] ss:$16 sps:$4 sm:$0xff]   ;;  %v1723_v6 = vld [vmem:[#allocation2 + $0x8] ss:$16 sps:$4 sm:$0xff]   ;;  %165 = vmatprep.subr.bf16.mxu1 %v1721_v5  ;;  %v1724_v8 = vld [vmem:[#allocation2 + $0x2c] ss:$16 sps:$4 sm:$0xff]  }
  0x3a   :  { %125 = vmatpush1.bf16.msra.mxu0 %v1717_v2  ;;  %v71_v7 = vld [vmem:[%s2121_s0] sm:$0xf]  ;;  %166 = vmatpush1.bf16.msra.mxu1 %v1723_v6  ;;  %v1726_v9 = vld [vmem:[#allocation2 + $0x28] ss:$16 sps:$4 sm:$0xff]   ;;  %v1729_v10 = vld [vmem:[#allocation4 + $0x4] ss:$12 sps:$4 sm:$0xff]  }
  0x3b   :  { %126 = vmatprep.subr.bf16.mxu0 %v1718_v3  ;;  %167 = vmatprep.subr.bf16.mxu1 %v1724_v8  ;;  %v1727_v11 = vld [vmem:[#allocation4] ss:$12 sps:$4 sm:$0xff]   ;;  %v1732_v12 = vld [vmem:[#allocation4 + $0x1c] ss:$12 sps:$4 sm:$0xff]   ;;  %v1730_v13 = vld [vmem:[#allocation4 + $0x18] ss:$12 sps:$4 sm:$0xff]  }
  0x3c   :  { %v1735_v14 = vld [vmem:[#allocation4 + $0x34] ss:$12 sps:$4 sm:$0xff]   ;;  %v1733_v15 = vld [vmem:[#allocation4 + $0x30] ss:$12 sps:$4 sm:$0xff]   ;;  %v1738_v16 = vld [vmem:[#allocation4 + $0x4c] ss:$12 sps:$4 sm:$0xff]  }
  0x3d   :  { %v1736_v17 = vld [vmem:[#allocation4 + $0x48] ss:$12 sps:$4 sm:$0xff]   ;;  %v1741_v18 = vld [vmem:[#allocation4 + $0x64] ss:$12 sps:$4 sm:$0xff]   ;;  %v1739_v19 = vld [vmem:[#allocation4 + $0x60] ss:$12 sps:$4 sm:$0xff]  }
  0x3e   :  { %127 = vmatpush1.bf16.msra.mxu0 %v1720_v4  ;;  %168 = vmatpush1.bf16.msra.mxu1 %v1726_v9  ;;  %v1744_v20 = vld [vmem:[#allocation4 + $0x7c] ss:$12 sps:$4 sm:$0xff]   ;;  %v1742_v21 = vld [vmem:[#allocation4 + $0x78] ss:$12 sps:$4 sm:$0xff]   ;;  %v1747_v22 = vld [vmem:[#allocation4 + $0x94] ss:$12 sps:$4 sm:$0xff]  }
  0x3f   :  { %1016 = vmatprep.subr.bf16.mxu0 %v1729_v10  ;;  %v1745_v23 = vld [vmem:[#allocation4 + $0x90] ss:$12 sps:$4 sm:$0xff]   ;;  %v1750_v24 = vld [vmem:[#allocation4 + $0xac] ss:$12 sps:$4 sm:$0xff]   ;;  %v1748_v25 = vld [vmem:[#allocation4 + $0xa8] ss:$12 sps:$4 sm:$0xff]  }
  0x40   :  { %v1753_v26 = vld [vmem:[#allocation4 + $0xc4] ss:$12 sps:$4 sm:$0xff]   ;;  %v1754_v27 = vld [vmem:[#allocation4 + $0xc8] ss:$12 sps:$4 sm:$0xff]   ;;  %v1751_v28 = vld [vmem:[#allocation4 + $0xc0] ss:$12 sps:$4 sm:$0xff]  }
  0x41   :  { %1479 = vmatmul.mubr.msk.bf16.vlgmr.msra.gmra.mrb[0].mxu0 %vm120_vm0, %v71_v7  ;;  %1480 = vmatmul.mubr.msk.bf16.vlgmr.msra.gmra.mrb[0].mxu1 %vm120_vm0, %v71_v7  ;;  %v1755_v29 = vld [vmem:[#allocation4 + $0x8] ss:$12 sps:$4 sm:$0xff]   ;;  %v1759_v31 = vld [vmem:[#allocation4 + $0xe0] ss:$12 sps:$4 sm:$0xff]   ;;  %v1756_v32 = vld [vmem:[#allocation4 + $0xd8] ss:$12 sps:$4 sm:$0xff]  }
  0x42   :  { %1017 = vmatpush1.bf16.msra.mxu0 %v1727_v11  ;;  %1602 = vmatprep.subr.bf16.mxu1 %v1754_v27  ;;  %v1758_v30 = vld [vmem:[#allocation4 + $0xdc] ss:$12 sps:$4 sm:$0xff]   ;;  %v1760_v33 = vld [vmem:[#allocation4 + $0x20] ss:$12 sps:$4 sm:$0xff]   ;;  %v1764_v35 = vld [vmem:[#allocation4 + $0xf8] ss:$12 sps:$4 sm:$0xff]  }
  0x43   :  { %1018 = vmatprep.subr.bf16.mxu0 %v1732_v12  ;;  %1603 = vmatpush3.bf16.msra.mxu1 %v1755_v29  ;;  %v1763_v34 = vld [vmem:[#allocation4 + $0xf4] ss:$12 sps:$4 sm:$0xff]   ;;  %v1761_v36 = vld [vmem:[#allocation4 + $0xf0] ss:$12 sps:$4 sm:$0xff]   ;;  %v1765_v37 = vld [vmem:[#allocation4 + $0x38] ss:$12 sps:$4 sm:$0xff]  }
  0x44   :  { %1604 = vmatprep.subr.bf16.mxu1 %v1759_v31  ;;  %v1768_v38 = vld [vmem:[#allocation4 + $0x10c] ss:$12 sps:$4 sm:$0xff]   ;;  %v1769_v39 = vld [vmem:[#allocation4 + $0x110] ss:$12 sps:$4 sm:$0xff]   ;;  %v1766_v40 = vld [vmem:[#allocation4 + $0x108] ss:$12 sps:$4 sm:$0xff]  }
  0x45   :  { %v1770_v41 = vld [vmem:[#allocation4 + $0x50] ss:$12 sps:$4 sm:$0xff]   ;;  %v1774_v43 = vld [vmem:[#allocation4 + $0x128] ss:$12 sps:$4 sm:$0xff]   ;;  %v1771_v44 = vld [vmem:[#allocation4 + $0x120] ss:$12 sps:$4 sm:$0xff]  }
  0x46   :  { %1019 = vmatpush1.bf16.msra.mxu0 %v1730_v13  ;;  %v1773_v42 = vld [vmem:[#allocation4 + $0x124] ss:$12 sps:$4 sm:$0xff]   ;;  %v1775_v45 = vld [vmem:[#allocation4 + $0x68] ss:$12 sps:$4 sm:$0xff]   ;;  %v1779_v47 = vld [vmem:[#allocation4 + $0x140] ss:$12 sps:$4 sm:$0xff]  }
  0x47   :  { %1020 = vmatprep.subr.bf16.mxu0 %v1735_v14  ;;  %1605 = vmatpush3.bf16.msra.mxu1 %v1760_v33  ;;  %v1778_v46 = vld [vmem:[#allocation4 + $0x13c] ss:$12 sps:$4 sm:$0xff]   ;;  %v1776_v48 = vld [vmem:[#allocation4 + $0x138] ss:$12 sps:$4 sm:$0xff]   ;;  %v1780_v49 = vld [vmem:[#allocation4 + $0x80] ss:$12 sps:$4 sm:$0xff]  }
  0x48   :  { %1606 = vmatprep.subr.bf16.mxu1 %v1764_v35  ;;  %v1783_v50 = vld [vmem:[#allocation4 + $0x154] ss:$12 sps:$4 sm:$0xff]   ;;  %v1784_v51 = vld [vmem:[#allocation4 + $0x158] ss:$12 sps:$4 sm:$0xff]   ;;  %v1781_v52 = vld [vmem:[#allocation4 + $0x150] ss:$12 sps:$4 sm:$0xff]  }
  0x49   :  { %v1785_v53 = vld [vmem:[#allocation4 + $0x98] ss:$12 sps:$4 sm:$0xff]   ;;  %v1789_v55 = vld [vmem:[#allocation4 + $0x170] ss:$12 sps:$4 sm:$0xff]   ;;  %v1786_v56 = vld [vmem:[#allocation4 + $0x168] ss:$12 sps:$4 sm:$0xff]  }
  0x4a   :  { %1021 = vmatpush1.bf16.msra.mxu0 %v1733_v15  ;;  %v1788_v54 = vld [vmem:[#allocation4 + $0x16c] ss:$12 sps:$4 sm:$0xff]   ;;  %v1790_v57 = vld [vmem:[#allocation4 + $0xb0] ss:$12 sps:$4 sm:$0xff]   ;;  %v1794_v59 = vld [vmem:[#allocation4 + $0x248] ss:$12 sps:$4 sm:$0xff]  }
  0x4b   :  { %1022 = vmatprep.subr.bf16.mxu0 %v1738_v16  ;;  %1607 = vmatpush3.bf16.msra.mxu1 %v1765_v37  ;;  %v1793_v58 = vld [vmem:[#allocation4 + $0x184] ss:$12 sps:$4 sm:$0xff]   ;;  %vm1970_vm1 = vmmov 0  }
  0x4c   :  { %1608 = vmatprep.subr.bf16.mxu1 %v1769_v39 }
  0x4e   :  { %1023 = vmatpush1.bf16.msra.mxu0 %v1736_v17 }
  0x4f   :  { %1024 = vmatprep.subr.bf16.mxu0 %v1741_v18  ;;  %1609 = vmatpush3.bf16.msra.mxu1 %v1770_v41 }
  0x50   :  { %1610 = vmatprep.subr.bf16.mxu1 %v1774_v43 }
  0x52   :  { %1025 = vmatpush1.bf16.msra.mxu0 %v1739_v19 }
  0x53   :  { %1026 = vmatprep.subr.bf16.mxu0 %v1744_v20  ;;  %1611 = vmatpush3.bf16.msra.mxu1 %v1775_v45 }
  0x54   :  { %1612 = vmatprep.subr.bf16.mxu1 %v1779_v47 }
  0x56   :  { %1027 = vmatpush1.bf16.msra.mxu0 %v1742_v21 }
  0x57   :  { %1028 = vmatprep.subr.bf16.mxu0 %v1747_v22  ;;  %1613 = vmatpush3.bf16.msra.mxu1 %v1780_v49 }
  0x58   :  { %1614 = vmatprep.subr.bf16.mxu1 %v1784_v51 }
  0x5a   :  { %1029 = vmatpush1.bf16.msra.mxu0 %v1745_v23 }
  0x5b   :  { %1030 = vmatprep.subr.bf16.mxu0 %v1750_v24  ;;  %1615 = vmatpush3.bf16.msra.mxu1 %v1785_v53 }
  0x5c   :  { %1616 = vmatprep.subr.bf16.mxu1 %v1789_v55 }
  0x5e   :  { %1031 = vmatpush1.bf16.msra.mxu0 %v1748_v25 }
  0x5f   :  { %1032 = vmatprep.subr.bf16.mxu0 %v1753_v26  ;;  %1617 = vmatpush3.bf16.msra.mxu1 %v1790_v57  ;;  %v281_v57 = vlaneseq }
  0x60   :  { %1624 = vmatprep.subr.bf16.mxu1 %v1794_v59 }
  0x62   :  { %1033 = vmatpush1.bf16.msra.mxu0 %v1751_v28 }
  0x63   :  { %1034 = vmatprep.subr.bf16.mxu0 %v1758_v30 }
  0x66   :  { %1035 = vmatpush1.bf16.msra.mxu0 %v1756_v32 }
  0x67   :  { %1036 = vmatprep.subr.bf16.mxu0 %v1763_v34 }
  0x6a   :  { %1037 = vmatpush1.bf16.msra.mxu0 %v1761_v36 }
  0x6b   :  { %1038 = vmatprep.subr.bf16.mxu0 %v1768_v38 }
  0x6e   :  { %1039 = vmatpush1.bf16.msra.mxu0 %v1766_v40 }
  0x6f   :  { %1040 = vmatprep.subr.bf16.mxu0 %v1773_v42 }
  0x72   :  { %1041 = vmatpush1.bf16.msra.mxu0 %v1771_v44 }
  0x73   :  { %1042 = vmatprep.subr.bf16.mxu0 %v1778_v46 }
  0x76   :  { %1043 = vmatpush1.bf16.msra.mxu0 %v1776_v48 }
  0x77   :  { %1044 = vmatprep.subr.bf16.mxu0 %v1783_v50 }
  0x7a   :  { %1045 = vmatpush1.bf16.msra.mxu0 %v1781_v52 }
  0x7b   :  { %1046 = vmatprep.subr.bf16.mxu0 %v1788_v54 }
  0x7e   :  { %1047 = vmatpush1.bf16.msra.mxu0 %v1786_v56 }
  0x7f   :  { %1057 = vmatprep.subr.bf16.mxu0 %v1793_v58 }
 0x114   :  { %v158_v60 = vpop.f32.mrb[0].mxu0  ;;  %v199_v3 = vpop.f32.mrb[0].mxu1 }
 0x115   :  { %v206_v61 = vrot.slane %v158_v60, 4  ;;  %v160_v62 = vpop.f32.mrb[1].mxu0  ;;  %v218_v5 = vrot.slane %v199_v3, 4  ;;  %v201_v6 = vpop.f32.mrb[1].mxu1 }
 0x116   :  { %v212_v63 = vrot.slane %v160_v62, 4  ;;  %v162_v0 = vpop.f32.mrb[2].mxu0  ;;  %v224_v8 = vrot.slane %v201_v6, 4  ;;  %v203_v9 = vpop.f32.mrb[2].mxu1 }
 0x117   :  { %v207_v1 = vadd.f32 %v206_v61, %v158_v60  ;;  %v163_v2 = vpop.f32.mrb[3].mxu0  ;;  %v219_v11 = vadd.f32 %v218_v5, %v199_v3  ;;  %v204_v12 = vpop.f32.mrb[3].mxu1 }
 0x118   :  { %v213_v4 = vadd.f32 %v212_v63, %v160_v62  ;;  %v225_v14 = vadd.f32 %v224_v8, %v201_v6 }
 0x119   :  { %v208_v7 = vrot.slane %v207_v1, 2  ;;  %v220_v16 = vrot.slane %v219_v11, 2 }
 0x11a   :  { %v214_v10 = vrot.slane %v213_v4, 2  ;;  %v226_v18 = vrot.slane %v225_v14, 2 }
 0x11b   :  { %v209_v13 = vadd.f32 %v208_v7, %v207_v1  ;;  %v221_v20 = vadd.f32 %v220_v16, %v219_v11  ;;  %v282_v1 = vshrl.u32 %v281_v57, 7  ;;  %v2076_v7 = vld [vmem:[%s2123_s2] sm:$0xf] }
 0x11c   :  { %v215_v15 = vadd.f32 %v214_v10, %v213_v4  ;;  %v227_v22 = vadd.f32 %v226_v18, %v225_v14  ;;  %v2087_v14 = vld [vmem:[%s2124_s3] sm:$0xf] }
 0x11d   :  { %v210_v17 = vrot.slane %v209_v13, 1  ;;  %v222_v24 = vrot.slane %v221_v20, 1  ;;  %v2078_v8 = vsub.s32 1, %v282_v1  ;;  %v295_v11 = vsub.s32 3, %v282_v1 }
 0x11e   :  { %v216_v19 = vrot.slane %v215_v15, 1  ;;  %v228_v26 = vrot.slane %v227_v22, 1 }
 0x11f   :  { %v211_v21 = vadd.f32 %v210_v17, %v209_v13  ;;  %v223_v28 = vadd.f32 %v222_v24, %v221_v20  ;;  %v288_v12 = vrot.slane %v2076_v7, %v2078_v8  ;;  %v296_v18 = vrot.slane %v2076_v7, %v295_v11 }
 0x120   :  { %v217_v23 = vadd.f32 %v216_v19, %v215_v15  ;;  %v229_v30 = vadd.f32 %v228_v26, %v227_v22 }
 0x121   :  { %v231_v25 = vmul.f32 0.125, %v211_v21  ;;  %v233_v32 = vmul.f32 0.125, %v223_v28 }
 0x122   :  { %v232_v27 = vmul.f32 0.125, %v217_v23  ;;  %v234_v34 = vmul.f32 0.125, %v229_v30 }
 0x123   :  { %v2055_v29 = vsub.f32 %v158_v60, %v231_v25  ;;  %v2063_v36 = vsub.f32 %v199_v3, %v233_v32  ;;  %v334_v25 = vrot.slane %v2087_v14, %v2078_v8 }
 0x124   :  { %v2057_v31 = vsub.f32 %v160_v62, %v232_v27  ;;  %v2065_v38 = vsub.f32 %v201_v6, %v234_v34  ;;  %v2071_v6 = vsub.s32 0, %v282_v1 }
 0x125   :  { %v239_v33 = vmul.f32 %v2055_v29, %v2055_v29  ;;  %v241_v41 = vmul.f32 %v2063_v36, %v2063_v36 }
 0x126   :  { %v240_v35 = vmul.f32 %v2057_v31, %v2057_v31  ;;  %v242_v42 = vmul.f32 %v2065_v38, %v2065_v38  ;;  %v284_v10 = vrot.slane %v2076_v7, %v2071_v6  ;;  %v330_v21 = vrot.slane %v2087_v14, %v2071_v6 }
 0x127   :  { %v243_v37 = vrot.slane %v239_v33, 4  ;;  %v255_v48 = vrot.slane %v241_v41, 4 }
 0x128   :  { %v249_v39 = vrot.slane %v240_v35, 4  ;;  %v261_v45 = vrot.slane %v242_v42, 4 }
 0x129   :  { %v244_v40 = vadd.f32 %v243_v37, %v239_v33  ;;  %v256_v55 = vadd.f32 %v255_v48, %v241_v41  ;;  %v342_v33 = vrot.slane %v2087_v14, %v295_v11  ;;  %v1796_v48 = vld [vmem:[#allocation4 + $0x198] ss:$12 sps:$4 sm:$0xff]  }
 0x12a   :  { %v250_v43 = vadd.f32 %v249_v39, %v240_v35  ;;  %v262_v49 = vadd.f32 %v261_v45, %v242_v42  ;;  %v1798_v45 = vld [vmem:[#allocation4 + $0x19c] ss:$12 sps:$4 sm:$0xff]   ;;  %v1824_v11 = vld [vmem:[#allocation4 + $0x2d8] ss:$12 sps:$4 sm:$0xff]  }
 0x12b   :  { %v245_v44 = vrot.slane %v244_v40, 2  ;;  %v257_v63 = vrot.slane %v256_v55, 2 }
 0x12c   :  { %v251_v46 = vrot.slane %v250_v43, 2  ;;  %v263_v52 = vrot.slane %v262_v49, 2 }
 0x12d   :  { %v246_v47 = vadd.f32 %v245_v44, %v244_v40  ;;  %v258_v4 = vadd.f32 %v257_v63, %v256_v55  ;;  %v1795_v44 = vld [vmem:[#allocation4 + $0x188] ss:$12 sps:$4 sm:$0xff]   ;;  %v1808_v55 = vld [vmem:[#allocation4 + $0x1cc] ss:$12 sps:$4 sm:$0xff]  }
 0x12e   :  { %v252_v50 = vadd.f32 %v251_v46, %v250_v43  ;;  %v264_v56 = vadd.f32 %v263_v52, %v262_v49  ;;  %v1791_v43 = vld [vmem:[#allocation4 + $0x180] ss:$12 sps:$4 sm:$0xff]   ;;  %v2101_v49 = vsub.s32 2, %v282_v1  ;;  %v1801_v52 = vld [vmem:[#allocation4 + $0x1b0] ss:$12 sps:$4 sm:$0xff]  }
 0x12f   :  { %v247_v51 = vrot.slane %v246_v47, 1  ;;  %v259_v9 = vrot.slane %v258_v4, 1  ;;  %v1799_v46 = vld [vmem:[#allocation4 + $0x260] ss:$12 sps:$4 sm:$0xff]  }
 0x130   :  { %v253_v53 = vrot.slane %v252_v50, 1  ;;  %v265_v60 = vrot.slane %v264_v56, 1  ;;  %v1811_v63 = vld [vmem:[#allocation4 + $0x1e0] ss:$12 sps:$4 sm:$0xff]  }
 0x131   :  { %v248_v54 = vadd.f32 %v247_v51, %v246_v47  ;;  %v260_v15 = vadd.f32 %v259_v9, %v258_v4  ;;  %v1804_v51 = vld [vmem:[#allocation4 + $0x278] ss:$12 sps:$4 sm:$0xff]   ;;  %v338_v9 = vrot.slane %v2087_v14, %v2101_v49 }
 0x132   :  { %v254_v58 = vadd.f32 %v253_v53, %v252_v50  ;;  %v266_v0 = vadd.f32 %v265_v60, %v264_v56  ;;  %v1803_v50 = vld [vmem:[#allocation4 + $0x1b4] ss:$12 sps:$4 sm:$0xff]   ;;  %v1805_v53 = vld [vmem:[#allocation4 + $0x1b8] ss:$12 sps:$4 sm:$0xff]   ;;  %v1809_v56 = vld [vmem:[#allocation4 + $0x290] ss:$12 sps:$4 sm:$0xff]  }
 0x133   :  { %v267_v59 = vmul.f32 0.125, %v248_v54  ;;  %v269_v24 = vmul.f32 0.125, %v260_v15  ;;  %v292_v54 = vrot.slane %v2076_v7, %v2101_v49  ;;  %v1816_v4 = vld [vmem:[#allocation4 + $0x1f8] ss:$12 sps:$4 sm:$0xff]  }
 0x134   :  { %v268_v61 = vmul.f32 0.125, %v254_v58  ;;  %v270_v3 = vmul.f32 0.125, %v266_v0  ;;  %v1806_v58 = vld [vmem:[#allocation4 + $0x1c8] ss:$12 sps:$4 sm:$0xff]   ;;  %v1833_v14 = vld [vmem:[#allocation4 + $0x244] ss:$12 sps:$4 sm:$0xff]  }
 0x135   :  { %v271_v62 = vadd.f32 1e-05, %v267_v59  ;;  %v273_v34 = vadd.f32 1e-05, %v269_v24  ;;  %v1810_v59 = vld [vmem:[#allocation4 + $0x1d0] ss:$12 sps:$4 sm:$0xff]  }
 0x136   :  { %v272_v2 = vadd.f32 1e-05, %v268_v61  ;;  %v274_v5 = vadd.f32 1e-05, %v270_v3  ;;  %v1813_v61 = vld [vmem:[#allocation4 + $0x1e4] ss:$12 sps:$4 sm:$0xff]  }
 0x137   :  { %1879 = vrsqrt.f32 %v271_v62  ;;  %v1814_v62 = vld [vmem:[#allocation4 + $0x2a8] ss:$12 sps:$4 sm:$0xff]   ;;  %v1819_v3 = vld [vmem:[#allocation4 + $0x2c0] ss:$12 sps:$4 sm:$0xff]  }
 0x138   :  { %1881 = vrsqrt.f32 %v272_v2  ;;  %v1815_v0 = vld [vmem:[#allocation4 + $0x1e8] ss:$12 sps:$4 sm:$0xff]  }
 0x139   :  { %1883 = vrsqrt.f32 %v274_v5  ;;  %v1818_v2 = vld [vmem:[#allocation4 + $0x1fc] ss:$12 sps:$4 sm:$0xff]   ;;  %v1820_v5 = vld [vmem:[#allocation4 + $0x200] ss:$12 sps:$4 sm:$0xff]  }
 0x13a   :  { %1885 = vrsqrt.f32 %v273_v34  ;;  %v1839_v24 = vld [vmem:[#allocation4 + $0x274] ss:$12 sps:$4 sm:$0xff]  }
 0x13b   :  { %v1851_v34 = vld [vmem:[#allocation4 + $0x2d4] ss:$12 sps:$4 sm:$0xff]  }
 0x141   :  { %v1880_v13 = vpop.eup %1879 }
 0x142   :  { %v1882_v16 = vpop.eup %1881  ;;  %v301_v17 = vmul.f32 %v1880_v13, %v284_v10  ;;  %v1823_v10 = vld [vmem:[#allocation4 + $0x214] ss:$12 sps:$4 sm:$0xff]   ;;  %v1825_v13 = vld [vmem:[#allocation4 + $0x218] ss:$12 sps:$4 sm:$0xff]  }
 0x143   :  { %v302_v19 = vmul.f32 %v1882_v16, %v288_v12  ;;  %v1884_v22 = vpop.eup %1883  ;;  %v1821_v12 = vld [vmem:[#allocation4 + $0x210] ss:$12 sps:$4 sm:$0xff]   ;;  %v1828_v16 = vld [vmem:[#allocation4 + $0x22c] ss:$12 sps:$4 sm:$0xff]  }
 0x144   :  { %v308_v20 = vrot.slane %v301_v17, %v2071_v6  ;;  %v304_v27 = vmul.f32 %v1884_v22, %v296_v18  ;;  %v1886_v57 = vpop.eup %1885  ;;  %v1829_v17 = vld [vmem:[#allocation4 + $0x2f0] ss:$12 sps:$4 sm:$0xff]   ;;  %v1826_v18 = vld [vmem:[#allocation4 + $0x228] ss:$12 sps:$4 sm:$0xff]  }
 0x145   :  { %v312_v23 = vrot.slane %v302_v19, %v2071_v6  ;;  %v303_v60 = vmul.f32 %v1886_v57, %v292_v54  ;;  %v1836_v22 = vld [vmem:[#allocation4 + $0x25c] ss:$12 sps:$4 sm:$0xff]   ;;  %v1969_v54 = vmov 0.0  }
 0x146   :  { %v321_v26 = vmul.f32 %v308_v20, %v2055_v29  ;;  %v320_v32 = vrot.slane %v304_v27, %v2071_v6  ;;  %v1831_v20 = vld [vmem:[#allocation4 + $0x240] ss:$12 sps:$4 sm:$0xff]   ;;  %v1840_v27 = vld [vmem:[#allocation4 + $0x288] ss:$12 sps:$4 sm:$0xff]  }
 0x147   :  { %v322_v28 = vmul.f32 %v312_v23, %v2057_v31  ;;  %v316_v1 = vrot.slane %v303_v60, %v2071_v6  ;;  %v1834_v23 = vld [vmem:[#allocation4 + $0x258] ss:$12 sps:$4 sm:$0xff]   ;;  %v487_v60 = vld [vmem:[%s2126_s5] sm:$0x7] }
 0x148   :  { %v347_v30 = vadd.f32 %v330_v21, %v321_v26  ;;  %v324_v37 = vmul.f32 %v320_v32, %v2065_v38  ;;  %v1800_v38 = vld [vmem:[#allocation4 + $0x1a0] ss:$12 sps:$4 sm:$0xff]   ;;  %v1848_v32 = vld [vmem:[#allocation4 + $0x2bc] ss:$12 sps:$4 sm:$0xff]  }
 0x149   :  { %v348_v35 = vadd.f32 %v334_v25, %v322_v28  ;;  %v323_v7 = vmul.f32 %v316_v1, %v2063_v36  ;;  %v1830_v36 = vld [vmem:[#allocation4 + $0x230] ss:$12 sps:$4 sm:$0xff]   ;;  %v1842_v26 = vld [vmem:[#allocation4 + $0x28c] ss:$12 sps:$4 sm:$0xff]  }
 0x14a   :  { %v351_v39 = vmax.f32 %v347_v30, 0.0  ;;  %v350_v41 = vadd.f32 %v342_v33, %v324_v37  ;;  %v1837_v25 = vld [vmem:[#allocation4 + $0x270] ss:$12 sps:$4 sm:$0xff]   ;;  %v1843_v30 = vld [vmem:[#allocation4 + $0x2a0] ss:$12 sps:$4 sm:$0xff]  }
 0x14b   :  { %v352_v40 = vmax.f32 %v348_v35, 0.0  ;;  %v349_v15 = vadd.f32 %v338_v9, %v323_v7  ;;  %v1845_v28 = vld [vmem:[#allocation4 + $0x2a4] ss:$12 sps:$4 sm:$0xff]   ;;  %v1854_v37 = vld [vmem:[#allocation4 + $0x2ec] ss:$12 sps:$4 sm:$0xff]   ;;  %v496_v7 = vrot.slane %v487_v60, %v2078_v8 }
 0x14c   :  { %v355_v29 = vpack.c.bf16 %v351_v39, %v351_v39  ;;  %v354_v31 = vmax.f32 %v350_v41, 0.0  ;;  %v1846_v33 = vld [vmem:[#allocation4 + $0x2b8] ss:$12 sps:$4 sm:$0xff]   ;;  %v1849_v35 = vld [vmem:[#allocation4 + $0x2d0] ss:$12 sps:$4 sm:$0xff]  }
 0x14d   :  { %v356_v42 = vpack.c.bf16 %v352_v40, %v352_v40  ;;  %v353_v19 = vmax.f32 %v349_v15, 0.0  ;;  %v1852_v39 = vld [vmem:[#allocation4 + $0x2e8] ss:$12 sps:$4 sm:$0xff]   ;;  %v1855_v40 = vld [vmem:[#allocation6 + $0x40] sm:$0xff]   ;;  %v1874_v8 = vld [vmem:[#allocation6 + $0x98] sm:$0xff]  }
 0x14e   :  { %v358_v47 = vpack.c.bf16 %v354_v31, %v354_v31  ;;  %v1856_v41 = vld [vmem:[#allocation6] sm:$0xff]  }
 0x14f   :  { %1048 = vmatprep.mubr.bf16.mxu0 %v356_v42  ;;  %1130 = vmatprep.mubr.bf16.mxu1 %v356_v42  ;;  %v357_v21 = vpack.c.bf16 %v353_v19, %v353_v19  ;;  %v1857_v42 = vld [vmem:[#allocation6 + $0x48] sm:$0xff]   ;;  %v1863_v31 = vld [vmem:[#allocation6 + $0x60] sm:$0xff]  }
 0x150   :  { %1049 = vmatmul.mubr.bf16.vlgmr.msra.gmra.mrb[4].mxu0 %v355_v29  ;;  %1131 = vmatmul.mubr.bf16.vlgmr.msra.gmra.mrb[4].mxu1 %v355_v29  ;;  %v1860_v29 = vld [vmem:[#allocation6 + $0x10] sm:$0xff]   ;;  %v1875_v19 = vld [vmem:[#allocation6 + $0xa0] sm:$0xff]  }
 0x151   :  { %1058 = vmatpush1.bf16.msra.mxu0 %v1791_v43  ;;  %1625 = vmatpush3.bf16.msra.mxu1 %v1795_v44  ;;  %v1858_v43 = vld [vmem:[#allocation6 + $0x8] sm:$0xff]   ;;  %v1859_v44 = vld [vmem:[#allocation6 + $0x50] sm:$0xff]  }
 0x152   :  { %1059 = vmatprep.subr.bf16.mxu0 %v1798_v45  ;;  %1626 = vmatprep.subr.bf16.mxu1 %v1799_v46  ;;  %v1861_v45 = vld [vmem:[#allocation6 + $0x58] sm:$0xff]  }
 0x153   :  { %1089 = vmatprep.mubr.bf16.mxu0 %v358_v47  ;;  %1170 = vmatprep.mubr.bf16.mxu1 %v358_v47  ;;  %v1862_v46 = vld [vmem:[#allocation6 + $0x18] sm:$0xff]   ;;  %v1864_v47 = vld [vmem:[#allocation6 + $0x20] sm:$0xff]  }
 0x155   :  { %1060 = vmatpush1.bf16.msra.mxu0 %v1796_v48  ;;  %1627 = vmatpush3.bf16.msra.mxu1 %v1800_v38  ;;  %v1865_v48 = vld [vmem:[#allocation6 + $0x68] sm:$0xff]  }
 0x156   :  { %1061 = vmatprep.subr.bf16.mxu0 %v1803_v50  ;;  %1628 = vmatprep.subr.bf16.mxu1 %v1804_v51  ;;  %v1866_v38 = vld [vmem:[#allocation6 + $0x28] sm:$0xff]   ;;  %v1867_v50 = vld [vmem:[#allocation6 + $0x70] sm:$0xff]  }
 0x157   :  { %v1868_v51 = vld [vmem:[#allocation6 + $0x30] sm:$0xff]  }
 0x159   :  { %1062 = vmatpush1.bf16.msra.mxu0 %v1801_v52  ;;  %1629 = vmatpush3.bf16.msra.mxu1 %v1805_v53  ;;  %v1869_v52 = vld [vmem:[#allocation6 + $0x78] sm:$0xff]  }
 0x15a   :  { %1063 = vmatprep.subr.bf16.mxu0 %v1808_v55  ;;  %1630 = vmatprep.subr.bf16.mxu1 %v1809_v56  ;;  %v1870_v53 = vld [vmem:[#allocation6 + $0x38] sm:$0xff]  }
 0x15d   :  { %1064 = vmatpush1.bf16.msra.mxu0 %v1806_v58  ;;  %1631 = vmatpush3.bf16.msra.mxu1 %v1810_v59 }
 0x15e   :  { %1065 = vmatprep.subr.bf16.mxu0 %v1813_v61  ;;  %1632 = vmatprep.subr.bf16.mxu1 %v1814_v62  ;;  %v500_v61 = vrot.slane %v487_v60, %v2101_v49 }
 0x161   :  { %1066 = vmatpush1.bf16.msra.mxu0 %v1811_v63  ;;  %1633 = vmatpush3.bf16.msra.mxu1 %v1815_v0 }
 0x162   :  { %1067 = vmatprep.subr.bf16.mxu0 %v1818_v2  ;;  %1634 = vmatprep.subr.bf16.mxu1 %v1819_v3 }
 0x165   :  { %1068 = vmatpush1.bf16.msra.mxu0 %v1816_v4  ;;  %1635 = vmatpush3.bf16.msra.mxu1 %v1820_v5  ;;  %v492_v5 = vrot.slane %v487_v60, %v2071_v6  ;;  %v1873_v6 = vld [vmem:[#allocation6 + $0x90] sm:$0xff]  }
 0x166   :  { %1069 = vmatprep.subr.bf16.mxu0 %v1823_v10  ;;  %1636 = vmatprep.subr.bf16.mxu1 %v1824_v11 }
 0x169   :  { %1070 = vmatpush1.bf16.msra.mxu0 %v1821_v12  ;;  %1637 = vmatpush3.bf16.msra.mxu1 %v1825_v13 }
 0x16a   :  { %1071 = vmatprep.subr.bf16.mxu0 %v1828_v16  ;;  %1638 = vmatprep.subr.bf16.mxu1 %v1829_v17 }
 0x16d   :  { %1072 = vmatpush1.bf16.msra.mxu0 %v1826_v18  ;;  %1639 = vmatpush3.bf16.msra.mxu1 %v1830_v36  ;;  %v1871_v18 = vld [vmem:[#allocation6 + $0x80] sm:$0xff]  }
 0x16e   :  { %1073 = vmatprep.subr.bf16.mxu0 %v1833_v14  ;;  %1646 = vmatprep.subr.bf16.mxu1 %v1855_v40  ;;  %v1872_v14 = vld [vmem:[#allocation6 + $0x88] sm:$0xff]  }
 0x170   :  { %1171 = vmatmul.mubr.bf16.vlgmr.msra.gmra.mrb[8].mxu1 %v357_v21 }
 0x171   :  { %1074 = vmatpush1.bf16.msra.mxu0 %v1831_v20  ;;  %1647 = vmatpush3.bf16.msra.mxu1 %v1856_v41  ;;  %v1876_v20 = vld [vmem:[#allocation6 + $0xa8] sm:$0xff]  }
 0x172   :  { %1075 = vmatprep.subr.bf16.mxu0 %v1836_v22  ;;  %1648 = vmatprep.subr.bf16.mxu1 %v1857_v42  ;;  %v1878_v22 = vld [vmem:[#allocation6 + $0xb8] sm:$0xff]  }
 0x175   :  { %1076 = vmatpush1.bf16.msra.mxu0 %v1834_v23  ;;  %1649 = vmatpush3.bf16.msra.mxu1 %v1858_v43 }
 0x176   :  { %1077 = vmatprep.subr.bf16.mxu0 %v1839_v24  ;;  %1650 = vmatprep.subr.bf16.mxu1 %v1859_v44 }
 0x179   :  { %1078 = vmatpush1.bf16.msra.mxu0 %v1837_v25  ;;  %1651 = vmatpush3.bf16.msra.mxu1 %v1860_v29 }
 0x17a   :  { %1079 = vmatprep.subr.bf16.mxu0 %v1842_v26  ;;  %1652 = vmatprep.subr.bf16.mxu1 %v1861_v45 }
 0x17d   :  { %1080 = vmatpush1.bf16.msra.mxu0 %v1840_v27  ;;  %1653 = vmatpush3.bf16.msra.mxu1 %v1862_v46 }
 0x17e   :  { %1081 = vmatprep.subr.bf16.mxu0 %v1845_v28  ;;  %1654 = vmatprep.subr.bf16.mxu1 %v1863_v31 }
 0x181   :  { %1082 = vmatpush1.bf16.msra.mxu0 %v1843_v30  ;;  %1655 = vmatpush3.bf16.msra.mxu1 %v1864_v47 }
 0x182   :  { %1083 = vmatprep.subr.bf16.mxu0 %v1848_v32  ;;  %1656 = vmatprep.subr.bf16.mxu1 %v1865_v48  ;;  %v1577_v32 = vld [vmem:[%s2128_s7] ss:$0 sm:$0xff] }
 0x185   :  { %1084 = vmatpush1.bf16.msra.mxu0 %v1846_v33  ;;  %1657 = vmatpush3.bf16.msra.mxu1 %v1866_v38 }
 0x186   :  { %1085 = vmatprep.subr.bf16.mxu0 %v1851_v34  ;;  %1658 = vmatprep.subr.bf16.mxu1 %v1867_v50 }
 0x189   :  { %1086 = vmatpush1.bf16.msra.mxu0 %v1849_v35  ;;  %1659 = vmatpush3.bf16.msra.mxu1 %v1868_v51 }
 0x18a   :  { %1087 = vmatprep.subr.bf16.mxu0 %v1854_v37  ;;  %1660 = vmatprep.subr.bf16.mxu1 %v1869_v52 }
 0x18d   :  { %1088 = vmatpush1.bf16.msra.mxu0 %v1852_v39  ;;  %1661 = vmatpush3.bf16.msra.mxu1 %v1870_v53 }
 0x18e   :  { %1677 = vmatprep.subr.bf16.mxu1 %v1969_v54 }
 0x190   :  { %1090 = vmatmul.mubr.bf16.vlgmr.msra.gmra.mrb[4].mxu0 %v357_v21  ;;  %v1877_v21 = vld [vmem:[#allocation6 + $0xb0] sm:$0xff]  }
 0x223   :  { %v1618_v55 = vpop.f32.mrb[4].mxu1 }
 0x224   :  { %v1619_v56 = vpop.f32.mrb[5].mxu1 }
 0x225   :  { %v1620_v57 = vadd.f32 %v1619_v56, %v1618_v55  ;;  %v1621_v58 = vpop.f32.mrb[6].mxu1 }
 0x226   :  { %v1622_v59 = vpop.f32.mrb[7].mxu1 }
 0x227   :  { %v1133_v0 = vadd.f32 %v1620_v57, %v500_v61 }
 0x243   :  { %v1640_v62 = vpop.f32.mrb[8].mxu1 }
 0x244   :  { %v1641_v63 = vpop.f32.mrb[9].mxu1 }
 0x245   :  { %v1642_v1 = vadd.f32 %v1641_v63, %v1640_v62  ;;  %v1643_v2 = vpop.f32.mrb[10].mxu1 }
 0x246   :  { %v1644_v3 = vpop.f32.mrb[11].mxu1 }
 0x247   :  { %v1173_v4 = vadd.f32 %v1642_v1, %v1133_v0 }
 0x249   :  { %v1180_v23 = vmax.f32 %v1173_v4, 0.0 }
 0x24b   :  { %v1183_v24 = vpack.c.bf16 %v1180_v23, %v1180_v23 }
 0x263   :  { %v1091_v9 = vpop.f32.mrb[4].mxu0 }
 0x264   :  { %v1697_v10 = vadd.f32 %v1091_v9, %v492_v5  ;;  %v1093_v11 = vpop.f32.mrb[5].mxu0 }
 0x265   :  { %v1698_v12 = vadd.f32 %v1093_v11, %v496_v7  ;;  %v1095_v13 = vpop.f32.mrb[6].mxu0 }
 0x266   :  { %v1178_v15 = vmax.f32 %v1697_v10, 0.0  ;;  %v1096_v16 = vpop.f32.mrb[7].mxu0 }
 0x267   :  { %v1179_v17 = vmax.f32 %v1698_v12, 0.0 }
 0x268   :  { %v1181_v36 = vpack.c.bf16 %v1178_v15, %v1178_v15 }
 0x269   :  { %v1182_v49 = vpack.c.bf16 %v1179_v17, %v1179_v17 }
 0x26b   :  { %1415 = vmatprep.mubr.bf16.mxu1 %v1182_v49 }
 0x26c   :  { %1416 = vmatmul.mubr.bf16.vlgmr.msra.gmra.mrb[12].mxu1 %v1181_v36 }
 0x26d   :  { %1678 = vmatpush3.bf16.msra.mxu1 %v1871_v18  ;;  %1693 = vmatprep.mubr.msk.bf16.mxu1 %vm1970_vm1, %v1969_v54 }
 0x26e   :  { %1679 = vmatprep.subr.bf16.mxu1 %v1969_v54 }
 0x271   :  { %1680 = vmatpush3.bf16.msra.mxu1 %v1872_v14 }
 0x272   :  { %1681 = vmatprep.subr.bf16.mxu1 %v1969_v54 }
 0x275   :  { %1682 = vmatpush3.bf16.msra.mxu1 %v1873_v6 }
 0x276   :  { %1683 = vmatprep.subr.bf16.mxu1 %v1969_v54 }
 0x279   :  { %1684 = vmatpush3.bf16.msra.mxu1 %v1874_v8 }
 0x27a   :  { %1685 = vmatprep.subr.bf16.mxu1 %v1969_v54 }
 0x27d   :  { %1686 = vmatpush3.bf16.msra.mxu1 %v1875_v19 }
 0x27e   :  { %1687 = vmatprep.subr.bf16.mxu1 %v1969_v54 }
 0x281   :  { %1688 = vmatpush3.bf16.msra.mxu1 %v1876_v20 }
 0x282   :  { %1689 = vmatprep.subr.bf16.mxu1 %v1969_v54 }
 0x285   :  { %1690 = vmatpush3.bf16.msra.mxu1 %v1877_v21 }
 0x286   :  { %1691 = vmatprep.subr.bf16.mxu1 %v1969_v54 }
 0x289   :  { %1692 = vmatpush3.bf16.msra.mxu1 %v1878_v22 }
 0x28c   :  { %1694 = vmatmul.mubr.bf16.vlgmr.msra.gmra.mrb[16].mxu1 %v1183_v24 }
 0x33f   :  { %v1662_v25 = vpop.f32.mrb[12].mxu1 }
 0x340   :  { %v1663_v26 = vpop.f32.mrb[13].mxu1 }
 0x341   :  { %v1664_v27 = vadd.f32 %v1663_v26, %v1662_v25  ;;  %v1665_v28 = vpop.f32.mrb[14].mxu1 }
 0x342   :  { %v1666_v30 = vpop.f32.mrb[15].mxu1 }
 0x343   :  { %v1418_v33 = vadd.f32 %v1664_v27, %v1577_v32 }
 0x35f   :  { %v1457_v34 = vpop.f32.mrb[16].mxu1 }
 0x360   :  { %v1458_v35 = vadd.f32 %v1457_v34, %v1418_v33  ;;  %v1695_v37 = vpop.f32.mrb[17].mxu1 }
 0x361   :  { %v1460_v39 = vpop.f32.mrb[18].mxu1 }
 0x362   :  { %1887 = vtanh.f32 %v1458_v35  ;;  %v1696_v40 = vpop.f32.mrb[19].mxu1 }
 0x36c   :  { %v1888_v41 = vpop.eup %1887 }
 0x36d   :  { %1464 = vst [vmem:[%s2129_s8] sm:$0xff] %v1888_v41 }
 0x36e   :  { %1469 = vsyncpa [#allocation3], 1 }
 0x36f   :  { %1470 = vsyncpa [#allocation5], 1 }

</bundles_post_ra>
